<compile_context>
chip_gen: v7x
topology: tpu7x:2x2x1
jax: 0.10.0
libtpu: 0.0.40
codegen_flags: <defaults>
</compile_context>

<pallas_src>
import jax
import jax.numpy as jnp
from jax import lax
from jax.experimental import pallas as pl
from jax.experimental.pallas import tpu as pltpu


def _round_up(x, m):
    return (x + m - 1) // m * m


# ---------------------------------------------------------------------------
# Fused kernel factory (static shapes closed over)
# ---------------------------------------------------------------------------
def _make_bottleneck_kernel(H, W, Cin, Cout, Pp, Cp, PADL):
    HW = H * W
    TAPS = [(ty, tx) for ty in (-1, 0, 1) for tx in (-1, 0, 1)]

    def kernel(x_ref, w1_ref, w2_ref, w3_ref, b1_ref, b3_ref, o_ref,
               a1pad_ref, col_ref):
        x_cm = x_ref[0]                                   # (Cin, HW) f32, channel-major
        x_bf = x_cm.astype(jnp.bfloat16)

        # ---- stage 1: conv1x1 + folded BN + ReLU  -> (Pp, HW) f32 -----------------
        a1 = jnp.dot(w1_ref[...], x_bf, preferred_element_type=jnp.float32)
        a1 = jnp.maximum(a1 + b1_ref[...], 0.0)

        # ---- stage 2: 3x3 conv (stride 1) as ONE K = 9*Pp GEMM --------------------
        # bf16 lane-padded copy of a1: the pad lanes give free zero padding for the
        # vertical taps; only the pad strips are zeroed (the middle is overwritten).
        a1pad_ref[:, pl.ds(0, PADL)] = jnp.zeros((Pp, PADL), jnp.bfloat16)
        a1pad_ref[:, pl.ds(PADL + HW, PADL)] = jnp.zeros((Pp, PADL), jnp.bfloat16)
        a1pad_ref[:, pl.ds(PADL, HW)] = a1.astype(jnp.bfloat16)

        wcol = lax.broadcasted_iota(jnp.int32, (1, HW), 1) % W
        mask_l = wcol >= 1          # pixel has a valid left neighbour
        mask_r = wcol <= W - 2      # pixel has a valid right neighbour
        for t, (ty, tx) in enumerate(TAPS):
            tap = a1pad_ref[:, pl.ds(PADL + ty * W + tx, HW)]       # (Pp, HW) bf16
            if tx == -1:
                tap = jnp.where(mask_l, tap, jnp.zeros_like(tap))
            elif tx == 1:
                tap = jnp.where(mask_r, tap, jnp.zeros_like(tap))
            col_ref[pl.ds(t * Pp, Pp), :] = tap                     # aligned slab write

        a2 = jnp.dot(w2_ref[...], col_ref[...], preferred_element_type=jnp.float32)
        # Same BN module is reused after conv2 (intentional quirk of the PyTorch block).
        a2 = jnp.maximum(a2 + b1_ref[...], 0.0)

        # ---- stage 3: conv1x1 + folded BN3 + residual + ReLU ----------------------
        y3 = jnp.dot(w3_ref[...], a2.astype(jnp.bfloat16),
                     preferred_element_type=jnp.float32) + b3_ref[...]   # (Cp, HW)
        out = jnp.maximum(y3[:Cout, :] + x_cm, 0.0)       # Cin == Cout (downsample=None)
        o_ref[0] = out.astype(o_ref.dtype)

    return kernel


# ---------------------------------------------------------------------------
# Wrapper: BN folding, weight packing, pallas_call plumbing
# ---------------------------------------------------------------------------
def bottleneck_forward(x_nchw, params, stride=1, eps=1e-5):
    """Eval-mode forward of BottleNeck(in_planes, planes, stride=1, downsample=None)."""
    if stride != 1:
        # TODO(synk): stride>1 requires the downsample branch (module default is None);
        # with downsample=None the PyTorch module itself cannot add the identity.
        raise NotImplementedError("BottleNeck kernel supports stride=1 / downsample=None")

    N, Cin, H, W = x_nchw.shape
    planes = params["w1"].shape[1]
    Cout = 4 * planes
    assert Cin == Cout, "residual add requires in_planes == planes*4 when downsample is None"
    HW = H * W

    Pp = _round_up(planes, 16)      # bf16 sublane packing; lane density comes from HW
    Cp = _round_up(Cout, 8)
    PADL = _round_up(W + 1, 128)    # lane pad on both sides of the stage-1 activation

    # Fold eval-mode BatchNorm into conv weights (scale) and per-channel biases.
    s1 = params["bn_g"] * lax.rsqrt(params["bn_v"] + eps)
    b1 = params["bn_b"] - params["bn_m"] * s1
    s3 = params["bn3_g"] * lax.rsqrt(params["bn3_v"] + eps)
    b3 = params["bn3_b"] - params["bn3_m"] * s3

    bf16 = jnp.bfloat16
    # Channel-major GEMM layouts: lhs rows = out channels, contraction along lanes.
    w1t = jnp.zeros((Pp, Cin), bf16).at[:planes, :].set(
        (params["w1"] * s1[None, :]).T.astype(bf16))
    w2s = (params["w2"] * s1[None, None, None, :]).reshape(9, planes, planes)
    w2t = jnp.zeros((Pp, 9, Pp), jnp.float32).at[:planes, :, :planes].set(
        jnp.transpose(w2s, (2, 0, 1)))                    # [cout, tap, cin]
    w2t = w2t.reshape(Pp, 9 * Pp).astype(bf16)
    w3t = jnp.zeros((Cp, Pp), bf16).at[:Cout, :planes].set(
        (params["w3"] * s3[None, :]).T.astype(bf16))
    b1p = jnp.zeros((Pp, 1), jnp.float32).at[:planes, 0].set(b1.astype(jnp.float32))
    b3p = jnp.zeros((Cp, 1), jnp.float32).at[:Cout, 0].set(b3.astype(jnp.float32))

    kernel = _make_bottleneck_kernel(H, W, Cin, Cout, Pp, Cp, PADL)

    # VMEM working set: double-buffered image/output blocks + resident weights +
    # bf16 staging scratch + f32 temporaries; cap at ~80% of physical VMEM.
    itemsize = jnp.dtype(x_nchw.dtype).itemsize
    budget = (2 * (Cin + Cout) * HW * itemsize
              + 2 * ((Pp * Cin + Pp * 9 * Pp + Cp * Pp) * 2 + (Pp + Cp) * 4)
              + (Pp * (HW + 2 * PADL) + 9 * Pp * HW) * 2
              + 4 * Pp * HW * 4)
    try:
        vmem_cap = pltpu.get_tpu_info().vmem_capacity_bytes
    except Exception:
        vmem_cap = 64 * 2**20       # conservative (v7x-sized) fallback
    vmem_limit = int(min(int(0.8 * vmem_cap), max(32 * 2**20, 2 * budget)))

    x_flat = x_nchw.reshape(N, Cin, HW)   # free reshape, stays channel-major

    out_flat = pl.pallas_call(
        kernel,
        out_shape=jax.ShapeDtypeStruct((N, Cout, HW), x_nchw.dtype),
        grid_spec=pltpu.PrefetchScalarGridSpec(
            num_scalar_prefetch=0,
            # TODO(synk): for v7x with N==1 or very large H*W, add a second "parallel"
            # grid axis over row blocks (with a 1-row halo) so both TensorCores get work.
            grid=(N,),
            in_specs=[
                pl.BlockSpec((1, Cin, HW), lambda b: (b, 0, 0)),   # image tile (channel-major)
                pl.BlockSpec((Pp, Cin), lambda b: (0, 0)),         # w1 (resident)
                pl.BlockSpec((Pp, 9 * Pp), lambda b: (0, 0)),      # w2, K-concatenated taps
                pl.BlockSpec((Cp, Pp), lambda b: (0, 0)),          # w3 (resident)
                pl.BlockSpec((Pp, 1), lambda b: (0, 0)),           # folded BN bias (shared)
                pl.BlockSpec((Cp, 1), lambda b: (0, 0)),           # folded BN3 bias
            ],
            out_specs=pl.BlockSpec((1, Cout, HW), lambda b: (b, 0, 0)),
            scratch_shapes=[
                pltpu.VMEM((Pp, PADL + HW + PADL), jnp.bfloat16),  # lane-padded stage-1 act
                pltpu.VMEM((9 * Pp, HW), jnp.bfloat16),            # im2col staging buffer
            ],
        ),
        compiler_params=pltpu.CompilerParams(
            dimension_semantics=("parallel",),
            vmem_limit_bytes=vmem_limit,
        ),
    )(x_flat, w1t, w2t, w3t, b1p, b3p)

    # NCHW-native output: a free reshape, no HBM transpose pass.
    return out_flat.reshape(N, Cout, H, W)


# ---------------------------------------------------------------------------
# Pure-JAX reference (eval-mode BN) for correctness checking
# ---------------------------------------------------------------------------
def _ref_forward(x, params, eps=1e-5):
    def bn(y, g, b, m, v):
        sh = (1, -1, 1, 1)
        return (y - m.reshape(sh)) * (g.reshape(sh) / jnp.sqrt(v.reshape(sh) + eps)) + b.reshape(sh)

    dn = ("NCHW", "OIHW", "NCHW")
    w1 = params["w1"].T[:, :, None, None]              # (planes, Cin, 1, 1)
    w2 = jnp.transpose(params["w2"], (3, 2, 0, 1))     # (planes, planes, 3, 3)
    w3 = params["w3"].T[:, :, None, None]              # (4*planes, planes, 1, 1)

    identity = x
    y = lax.conv_general_dilated(x, w1, (1, 1), "VALID", dimension_numbers=dn)
    y = jax.nn.relu(bn(y, params["bn_g"], params["bn_b"], params["bn_m"], params["bn_v"]))
    y = lax.conv_general_dilated(y, w2, (1, 1), ((1, 1), (1, 1)), dimension_numbers=dn)
    y = jax.nn.relu(bn(y, params["bn_g"], params["bn_b"], params["bn_m"], params["bn_v"]))
    y = lax.conv_general_dilated(y, w3, (1, 1), "VALID", dimension_numbers=dn)
    y = bn(y, params["bn3_g"], params["bn3_b"], params["bn3_m"], params["bn3_v"])
    return jax.nn.relu(y + identity)


# ---------------------------------------------------------------------------
# Main
# ---------------------------------------------------------------------------
if __name__ == "__main__":
    # BottleNeck(in_planes=16, planes=4, stride=1, downsample=None), eval mode.
    batch, planes, H, W = 2, 4, 16, 16
    expansion = 4
    in_planes = planes * expansion  # required for the residual add (downsample=None)

    key = jax.random.PRNGKey(0)
    ks = jax.random.split(key, 12)
    f32 = jnp.float32

    params = {
        # conv weights in GEMM-friendly layouts:
        #   w1: (Cin, planes), w2: (3, 3, planes, planes) [ky, kx, cin, cout], w3: (planes, 4*planes)
        "w1": 0.2 * jax.random.normal(ks[0], (in_planes, planes), f32),
        "w2": 0.2 * jax.random.normal(ks[1], (3, 3, planes, planes), f32),
        "w3": 0.2 * jax.random.normal(ks[2], (planes, planes * expansion), f32),
        # shared BN (applied after conv1 AND conv2, as in the PyTorch module)
        "bn_g": jax.random.uniform(ks[3], (planes,), f32, 0.5, 1.5),
        "bn_b": 0.1 * jax.random.normal(ks[4], (planes,), f32),
        "bn_m": 0.1 * jax.random.normal(ks[5], (planes,), f32),
        "bn_v": jax.random.uniform(ks[6], (planes,), f32, 0.5, 1.5),
        # bn3
        "bn3_g": jax.random.uniform(ks[7], (planes * expansion,), f32, 0.5, 1.5),
        "bn3_b": 0.1 * jax.random.normal(ks[8], (planes * expansion,), f32),
        "bn3_m": 0.1 * jax.random.normal(ks[9], (planes * expansion,), f32),
        "bn3_v": jax.random.uniform(ks[10], (planes * expansion,), f32, 0.5, 1.5),
    }

    x = jax.random.normal(ks[11], (batch, in_planes, H, W), f32)

    fwd = jax.jit(bottleneck_forward)   # hoist BN folding / weight packing into one trace
    out = jax.block_until_ready(fwd(x, params))
    ref = jax.block_until_ready(_ref_forward(x, params))

    assert out.shape == (batch, planes * expansion, H, W)
    # Kernel uses bf16 MXU operands with f32 accumulation; reference is pure f32,
    # so allow bf16-level tolerance.
    assert bool(jnp.allclose(out, ref, atol=5e-2, rtol=5e-2)), (
        f"mismatch vs pure-JAX reference: max abs err {float(jnp.max(jnp.abs(out - ref)))}")

    print("KERNEL_OK")
</pallas_src>

<mosaic_0001>
module attributes {stable_mosaic.version = 11 : i64} {
  func.func @kernel(%arg0: i32, %arg1: memref<1x16x256xf32, #tpu.memory_space<vmem>>, %arg2: memref<16x16xbf16, #tpu.memory_space<vmem>>, %arg3: memref<16x144xbf16, #tpu.memory_space<vmem>>, %arg4: memref<16x16xbf16, #tpu.memory_space<vmem>>, %arg5: memref<16x1xf32, #tpu.memory_space<vmem>>, %arg6: memref<16x1xf32, #tpu.memory_space<vmem>>, %arg7: memref<1x16x256xf32, #tpu.memory_space<vmem>>, %arg8: memref<16x512xbf16, #tpu.memory_space<vmem>>, %arg9: memref<144x256xbf16, #tpu.memory_space<vmem>>) attributes {dimension_semantics = [#tpu.dimension_semantics<parallel>], iteration_bounds = array<i64: 2>, scalar_prefetch = 0 : i64, scratch_operands = 2 : i64, tpu.core_type = #tpu.core_type<tc>, window_params = [{transform_indices = @transform_0, window_bounds = array<i64: 1, 16, 256>}, {pipeline_mode = #tpu.pipeline_mode<synchronous>, transform_indices = @transform_1, window_bounds = array<i64: 16, 16>}, {pipeline_mode = #tpu.pipeline_mode<synchronous>, transform_indices = @transform_2, window_bounds = array<i64: 16, 144>}, {pipeline_mode = #tpu.pipeline_mode<synchronous>, transform_indices = @transform_3, window_bounds = array<i64: 16, 16>}, {pipeline_mode = #tpu.pipeline_mode<synchronous>, transform_indices = @transform_4, window_bounds = array<i64: 16, 1>}, {pipeline_mode = #tpu.pipeline_mode<synchronous>, transform_indices = @transform_5, window_bounds = array<i64: 16, 1>}, {transform_indices = @transform_6, window_bounds = array<i64: 1, 16, 256>}]} {
    %c0 = arith.constant 0 : index
    %c0_0 = arith.constant 0 : index
    %c0_1 = arith.constant 0 : index
    %0 = vector.load %arg1[%c0, %c0_0, %c0_1] : memref<1x16x256xf32, #tpu.memory_space<vmem>>, vector<1x16x256xf32>
    %1 = vector.shape_cast %0 : vector<1x16x256xf32> to vector<16x256xf32>
    %2 = arith.truncf %1 : vector<16x256xf32> to vector<16x256xbf16>
    %c0_2 = arith.constant 0 : index
    %c0_3 = arith.constant 0 : index
    %3 = vector.load %arg2[%c0_2, %c0_3] : memref<16x16xbf16, #tpu.memory_space<vmem>>, vector<16x16xbf16>
    %cst = arith.constant dense<0.000000e+00> : vector<16x256xf32>
    %4 = tpu.matmul %3, %2, %cst {dimension_numbers = #tpu.dot_dimension_numbers<[1], [0], [0], [1], [0, 0, 1, 1], [], []>} : vector<16x16xbf16>, vector<16x256xbf16>, vector<16x256xf32> -> vector<16x256xf32>
    %c0_4 = arith.constant 0 : index
    %c0_5 = arith.constant 0 : index
    %5 = vector.load %arg5[%c0_4, %c0_5] : memref<16x1xf32, #tpu.memory_space<vmem>>, vector<16x1xf32>
    %6 = vector.broadcast %5 : vector<16x1xf32> to vector<16x256xf32>
    %7 = arith.addf %4, %6 : vector<16x256xf32>
    %cst_6 = arith.constant 0.000000e+00 : f32
    %8 = vector.broadcast %cst_6 : f32 to vector<16x256xf32>
    %9 = arith.maximumf %7, %8 : vector<16x256xf32>
    %cst_7 = arith.constant 0.000000e+00 : bf16
    %10 = vector.broadcast %cst_7 : bf16 to vector<16x128xbf16>
    %c0_8 = arith.constant 0 : index
    %c0_9 = arith.constant 0 : index
    %11 = vector.load %arg8[%c0_8, %c0_9] : memref<16x512xbf16, #tpu.memory_space<vmem>>, vector<16x128xbf16>
    tpu.vector_store %arg8[%c0_8, %c0_9], %10 {strides = array<i32>} : memref<16x512xbf16, #tpu.memory_space<vmem>>, vector<16x128xbf16>,
    %cst_10 = arith.constant 0.000000e+00 : bf16
    %12 = vector.broadcast %cst_10 : bf16 to vector<16x128xbf16>
    %c0_11 = arith.constant 0 : index
    %c384 = arith.constant 384 : index
    %13 = vector.load %arg8[%c0_11, %c384] : memref<16x512xbf16, #tpu.memory_space<vmem>>, vector<16x128xbf16>
    tpu.vector_store %arg8[%c0_11, %c384], %12 {strides = array<i32>} : memref<16x512xbf16, #tpu.memory_space<vmem>>, vector<16x128xbf16>,
    %14 = arith.truncf %9 : vector<16x256xf32> to vector<16x256xbf16>
    %c0_12 = arith.constant 0 : index
    %c128 = arith.constant 128 : index
    %15 = vector.load %arg8[%c0_12, %c128] : memref<16x512xbf16, #tpu.memory_space<vmem>>, vector<16x256xbf16>
    tpu.vector_store %arg8[%c0_12, %c128], %14 {strides = array<i32>} : memref<16x512xbf16, #tpu.memory_space<vmem>>, vector<16x256xbf16>,
    %16 = tpu.iota {dimensions = array<i32: 1>} : vector<1x256xi32>
    %c16_i32 = arith.constant 16 : i32
    %c0_i32 = arith.constant 0 : i32
    %17 = arith.cmpi eq, %c16_i32, %c0_i32 : i32
    %c1_i32 = arith.constant 1 : i32
    %18 = arith.select %17, %c1_i32, %c16_i32 : i32
    %19 = vector.broadcast %18 : i32 to vector<1x256xi32>
    %20 = arith.remsi %16, %19 : vector<1x256xi32>
    %c0_i32_13 = arith.constant 0 : i32
    %21 = vector.broadcast %c0_i32_13 : i32 to vector<1x256xi32>
    %22 = arith.cmpi ne, %20, %21 : vector<1x256xi32>
    %c0_i32_14 = arith.constant 0 : i32
    %23 = vector.broadcast %c0_i32_14 : i32 to vector<1x256xi32>
    %24 = arith.cmpi slt, %20, %23 : vector<1x256xi32>
    %c0_i32_15 = arith.constant 0 : i32
    %25 = arith.cmpi slt, %18, %c0_i32_15 : i32
    %26 = vector.broadcast %25 : i1 to vector<1x256xi1>
    %27 = vector.broadcast %26 : vector<1x256xi1> to vector<1x256xi1>
    %28 = arith.xori %24, %27 : vector<1x256xi1>
    %29 = arith.andi %28, %22 : vector<1x256xi1>
    %30 = vector.broadcast %18 : i32 to vector<1x256xi32>
    %31 = arith.addi %20, %30 : vector<1x256xi32>
    %32 = arith.select %29, %31, %20 : vector<1x256xi1>, vector<1x256xi32>
    %c1_i32_16 = arith.constant 1 : i32
    %33 = vector.broadcast %c1_i32_16 : i32 to vector<1x256xi32>
    %34 = arith.cmpi sge, %32, %33 : vector<1x256xi32>
    %c14_i32 = arith.constant 14 : i32
    %35 = vector.broadcast %c14_i32 : i32 to vector<1x256xi32>
    %36 = arith.cmpi sle, %32, %35 : vector<1x256xi32>
    %c0_17 = arith.constant 0 : index
    %c111 = arith.constant 111 : index
    %37 = vector.load %arg8[%c0_17, %c111] : memref<16x512xbf16, #tpu.memory_space<vmem>>, vector<16x256xbf16>
    %cst_18 = arith.constant 0.000000e+00 : bf16
    %38 = vector.broadcast %cst_18 : bf16 to vector<16x256xbf16>
    %39 = vector.shape_cast %34 : vector<1x256xi1> to vector<1x256xi1>
    %40 = vector.broadcast %39 : vector<1x256xi1> to vector<16x256xi1>
    %41 = arith.select %40, %37, %38 : vector<16x256xi1>, vector<16x256xbf16>
    %c0_19 = arith.constant 0 : index
    %c0_20 = arith.constant 0 : index
    %42 = vector.load %arg9[%c0_19, %c0_20] : memref<144x256xbf16, #tpu.memory_space<vmem>>, vector<16x256xbf16>
    tpu.vector_store %arg9[%c0_19, %c0_20], %41 {strides = array<i32>} : memref<144x256xbf16, #tpu.memory_space<vmem>>, vector<16x256xbf16>,
    %c0_21 = arith.constant 0 : index
    %c112 = arith.constant 112 : index
    %43 = vector.load %arg8[%c0_21, %c112] : memref<16x512xbf16, #tpu.memory_space<vmem>>, vector<16x256xbf16>
    %c16 = arith.constant 16 : index
    %c0_22 = arith.constant 0 : index
    %44 = vector.load %arg9[%c16, %c0_22] : memref<144x256xbf16, #tpu.memory_space<vmem>>, vector<16x256xbf16>
    tpu.vector_store %arg9[%c16, %c0_22], %43 {strides = array<i32>} : memref<144x256xbf16, #tpu.memory_space<vmem>>, vector<16x256xbf16>,
    %c0_23 = arith.constant 0 : index
    %c113 = arith.constant 113 : index
    %45 = vector.load %arg8[%c0_23, %c113] : memref<16x512xbf16, #tpu.memory_space<vmem>>, vector<16x256xbf16>
    %cst_24 = arith.constant 0.000000e+00 : bf16
    %46 = vector.broadcast %cst_24 : bf16 to vector<16x256xbf16>
    %47 = vector.shape_cast %36 : vector<1x256xi1> to vector<1x256xi1>
    %48 = vector.broadcast %47 : vector<1x256xi1> to vector<16x256xi1>
    %49 = arith.select %48, %45, %46 : vector<16x256xi1>, vector<16x256xbf16>
    %c32 = arith.constant 32 : index
    %c0_25 = arith.constant 0 : index
    %50 = vector.load %arg9[%c32, %c0_25] : memref<144x256xbf16, #tpu.memory_space<vmem>>, vector<16x256xbf16>
    tpu.vector_store %arg9[%c32, %c0_25], %49 {strides = array<i32>} : memref<144x256xbf16, #tpu.memory_space<vmem>>, vector<16x256xbf16>,
    %c0_26 = arith.constant 0 : index
    %c127 = arith.constant 127 : index
    %51 = vector.load %arg8[%c0_26, %c127] : memref<16x512xbf16, #tpu.memory_space<vmem>>, vector<16x256xbf16>
    %cst_27 = arith.constant 0.000000e+00 : bf16
    %52 = vector.broadcast %cst_27 : bf16 to vector<16x256xbf16>
    %53 = vector.shape_cast %34 : vector<1x256xi1> to vector<1x256xi1>
    %54 = vector.broadcast %53 : vector<1x256xi1> to vector<16x256xi1>
    %55 = arith.select %54, %51, %52 : vector<16x256xi1>, vector<16x256xbf16>
    %c48 = arith.constant 48 : index
    %c0_28 = arith.constant 0 : index
    %56 = vector.load %arg9[%c48, %c0_28] : memref<144x256xbf16, #tpu.memory_space<vmem>>, vector<16x256xbf16>
    tpu.vector_store %arg9[%c48, %c0_28], %55 {strides = array<i32>} : memref<144x256xbf16, #tpu.memory_space<vmem>>, vector<16x256xbf16>,
    %c0_29 = arith.constant 0 : index
    %c128_30 = arith.constant 128 : index
    %57 = vector.load %arg8[%c0_29, %c128_30] : memref<16x512xbf16, #tpu.memory_space<vmem>>, vector<16x256xbf16>
    %c64 = arith.constant 64 : index
    %c0_31 = arith.constant 0 : index
    %58 = vector.load %arg9[%c64, %c0_31] : memref<144x256xbf16, #tpu.memory_space<vmem>>, vector<16x256xbf16>
    tpu.vector_store %arg9[%c64, %c0_31], %57 {strides = array<i32>} : memref<144x256xbf16, #tpu.memory_space<vmem>>, vector<16x256xbf16>,
    %c0_32 = arith.constant 0 : index
    %c129 = arith.constant 129 : index
    %59 = vector.load %arg8[%c0_32, %c129] : memref<16x512xbf16, #tpu.memory_space<vmem>>, vector<16x256xbf16>
    %cst_33 = arith.constant 0.000000e+00 : bf16
    %60 = vector.broadcast %cst_33 : bf16 to vector<16x256xbf16>
    %61 = vector.shape_cast %36 : vector<1x256xi1> to vector<1x256xi1>
    %62 = vector.broadcast %61 : vector<1x256xi1> to vector<16x256xi1>
    %63 = arith.select %62, %59, %60 : vector<16x256xi1>, vector<16x256xbf16>
    %c80 = arith.constant 80 : index
    %c0_34 = arith.constant 0 : index
    %64 = vector.load %arg9[%c80, %c0_34] : memref<144x256xbf16, #tpu.memory_space<vmem>>, vector<16x256xbf16>
    tpu.vector_store %arg9[%c80, %c0_34], %63 {strides = array<i32>} : memref<144x256xbf16, #tpu.memory_space<vmem>>, vector<16x256xbf16>,
    %c0_35 = arith.constant 0 : index
    %c143 = arith.constant 143 : index
    %65 = vector.load %arg8[%c0_35, %c143] : memref<16x512xbf16, #tpu.memory_space<vmem>>, vector<16x256xbf16>
    %cst_36 = arith.constant 0.000000e+00 : bf16
    %66 = vector.broadcast %cst_36 : bf16 to vector<16x256xbf16>
    %67 = vector.shape_cast %34 : vector<1x256xi1> to vector<1x256xi1>
    %68 = vector.broadcast %67 : vector<1x256xi1> to vector<16x256xi1>
    %69 = arith.select %68, %65, %66 : vector<16x256xi1>, vector<16x256xbf16>
    %c96 = arith.constant 96 : index
    %c0_37 = arith.constant 0 : index
    %70 = vector.load %arg9[%c96, %c0_37] : memref<144x256xbf16, #tpu.memory_space<vmem>>, vector<16x256xbf16>
    tpu.vector_store %arg9[%c96, %c0_37], %69 {strides = array<i32>} : memref<144x256xbf16, #tpu.memory_space<vmem>>, vector<16x256xbf16>,
    %c0_38 = arith.constant 0 : index
    %c144 = arith.constant 144 : index
    %71 = vector.load %arg8[%c0_38, %c144] : memref<16x512xbf16, #tpu.memory_space<vmem>>, vector<16x256xbf16>
    %c112_39 = arith.constant 112 : index
    %c0_40 = arith.constant 0 : index
    %72 = vector.load %arg9[%c112_39, %c0_40] : memref<144x256xbf16, #tpu.memory_space<vmem>>, vector<16x256xbf16>
    tpu.vector_store %arg9[%c112_39, %c0_40], %71 {strides = array<i32>} : memref<144x256xbf16, #tpu.memory_space<vmem>>, vector<16x256xbf16>,
    %c0_41 = arith.constant 0 : index
    %c145 = arith.constant 145 : index
    %73 = vector.load %arg8[%c0_41, %c145] : memref<16x512xbf16, #tpu.memory_space<vmem>>, vector<16x256xbf16>
    %cst_42 = arith.constant 0.000000e+00 : bf16
    %74 = vector.broadcast %cst_42 : bf16 to vector<16x256xbf16>
    %75 = vector.shape_cast %36 : vector<1x256xi1> to vector<1x256xi1>
    %76 = vector.broadcast %75 : vector<1x256xi1> to vector<16x256xi1>
    %77 = arith.select %76, %73, %74 : vector<16x256xi1>, vector<16x256xbf16>
    %c128_43 = arith.constant 128 : index
    %c0_44 = arith.constant 0 : index
    %78 = vector.load %arg9[%c128_43, %c0_44] : memref<144x256xbf16, #tpu.memory_space<vmem>>, vector<16x256xbf16>
    tpu.vector_store %arg9[%c128_43, %c0_44], %77 {strides = array<i32>} : memref<144x256xbf16, #tpu.memory_space<vmem>>, vector<16x256xbf16>,
    %c0_45 = arith.constant 0 : index
    %c0_46 = arith.constant 0 : index
    %79 = vector.load %arg3[%c0_45, %c0_46] : memref<16x144xbf16, #tpu.memory_space<vmem>>, vector<16x144xbf16>
    %c0_47 = arith.constant 0 : index
    %c0_48 = arith.constant 0 : index
    %80 = vector.load %arg9[%c0_47, %c0_48] : memref<144x256xbf16, #tpu.memory_space<vmem>>, vector<144x256xbf16>
    %cst_49 = arith.constant dense<0.000000e+00> : vector<16x256xf32>
    %81 = tpu.matmul %79, %80, %cst_49 {dimension_numbers = #tpu.dot_dimension_numbers<[1], [0], [0], [1], [0, 0, 1, 1], [], []>} : vector<16x144xbf16>, vector<144x256xbf16>, vector<16x256xf32> -> vector<16x256xf32>
    %c0_50 = arith.constant 0 : index
    %c0_51 = arith.constant 0 : index
    %82 = vector.load %arg5[%c0_50, %c0_51] : memref<16x1xf32, #tpu.memory_space<vmem>>, vector<16x1xf32>
    %83 = vector.broadcast %82 : vector<16x1xf32> to vector<16x256xf32>
    %84 = arith.addf %81, %83 : vector<16x256xf32>
    %cst_52 = arith.constant 0.000000e+00 : f32
    %85 = vector.broadcast %cst_52 : f32 to vector<16x256xf32>
    %86 = arith.maximumf %84, %85 : vector<16x256xf32>
    %c0_53 = arith.constant 0 : index
    %c0_54 = arith.constant 0 : index
    %87 = vector.load %arg4[%c0_53, %c0_54] : memref<16x16xbf16, #tpu.memory_space<vmem>>, vector<16x16xbf16>
    %88 = arith.truncf %86 : vector<16x256xf32> to vector<16x256xbf16>
    %cst_55 = arith.constant dense<0.000000e+00> : vector<16x256xf32>
    %89 = tpu.matmul %87, %88, %cst_55 {dimension_numbers = #tpu.dot_dimension_numbers<[1], [0], [0], [1], [0, 0, 1, 1], [], []>} : vector<16x16xbf16>, vector<16x256xbf16>, vector<16x256xf32> -> vector<16x256xf32>
    %c0_56 = arith.constant 0 : index
    %c0_57 = arith.constant 0 : index
    %90 = vector.load %arg6[%c0_56, %c0_57] : memref<16x1xf32, #tpu.memory_space<vmem>>, vector<16x1xf32>
    %91 = vector.broadcast %90 : vector<16x1xf32> to vector<16x256xf32>
    %92 = arith.addf %89, %91 : vector<16x256xf32>
    %93 = arith.addf %92, %1 : vector<16x256xf32>
    %cst_58 = arith.constant 0.000000e+00 : f32
    %94 = vector.broadcast %cst_58 : f32 to vector<16x256xf32>
    %95 = arith.maximumf %93, %94 : vector<16x256xf32>
    %c0_59 = arith.constant 0 : index
    %c0_60 = arith.constant 0 : index
    %c0_61 = arith.constant 0 : index
    %96 = vector.load %arg7[%c0_59, %c0_60, %c0_61] : memref<1x16x256xf32, #tpu.memory_space<vmem>>, vector<1x16x256xf32>
    %97 = vector.shape_cast %96 : vector<1x16x256xf32> to vector<16x256xf32>
    %98 = vector.shape_cast %95 : vector<16x256xf32> to vector<1x16x256xf32>
    tpu.vector_store %arg7[%c0_59, %c0_60, %c0_61], %98 {strides = array<i32>} : memref<1x16x256xf32, #tpu.memory_space<vmem>>, vector<1x16x256xf32>,
    return
  }
  func.func @transform_0(%arg0: i32) -> (i32, i32, i32) {
    %c0_i32 = arith.constant 0 : i32
    %c0_i32_0 = arith.constant 0 : i32
    %c0_i32_1 = arith.constant 0 : i32
    return %arg0, %c0_i32, %c0_i32_0 : i32, i32, i32
  }
  func.func @transform_1(%arg0: i32) -> (i32, i32) {
    %c0_i32 = arith.constant 0 : i32
    %c0_i32_0 = arith.constant 0 : i32
    %c0_i32_1 = arith.constant 0 : i32
    return %c0_i32, %c0_i32_0 : i32, i32
  }
  func.func @transform_2(%arg0: i32) -> (i32, i32) {
    %c0_i32 = arith.constant 0 : i32
    %c0_i32_0 = arith.constant 0 : i32
    %c0_i32_1 = arith.constant 0 : i32
    return %c0_i32, %c0_i32_0 : i32, i32
  }
  func.func @transform_3(%arg0: i32) -> (i32, i32) {
    %c0_i32 = arith.constant 0 : i32
    %c0_i32_0 = arith.constant 0 : i32
    %c0_i32_1 = arith.constant 0 : i32
    return %c0_i32, %c0_i32_0 : i32, i32
  }
  func.func @transform_4(%arg0: i32) -> (i32, i32) {
    %c0_i32 = arith.constant 0 : i32
    %c0_i32_0 = arith.constant 0 : i32
    %c0_i32_1 = arith.constant 0 : i32
    return %c0_i32, %c0_i32_0 : i32, i32
  }
  func.func @transform_5(%arg0: i32) -> (i32, i32) {
    %c0_i32 = arith.constant 0 : i32
    %c0_i32_0 = arith.constant 0 : i32
    %c0_i32_1 = arith.constant 0 : i32
    return %c0_i32, %c0_i32_0 : i32, i32
  }
  func.func @transform_6(%arg0: i32) -> (i32, i32, i32) {
    %c0_i32 = arith.constant 0 : i32
    %c0_i32_0 = arith.constant 0 : i32
    %c0_i32_1 = arith.constant 0 : i32
    return %arg0, %c0_i32, %c0_i32_0 : i32, i32, i32
  }
}

</mosaic_0001>

<bundles_post_ra>
// kernel: bottleneck_forward.1
= control target key start
LH: loop header
LB: loop body
LE: loop exit
PB: predicated region body
PF: predicated region fallthrough
CT: control target
= control target key end

     0   :  { %s939_s21 = smov 0   ;;  %s1103_s0 = inlined_call_operand.vmem [shape: f32[2,16,256], index: 0, kind: input, shape index: {}]   ;;  %s1104_s1 = inlined_call_operand.vmem [shape: bf16[16,16], index: 1, kind: input, shape index: {}]   ;;  %s1105_s2 = inlined_call_operand.vmem [shape: bf16[16,144], index: 2, kind: input, shape index: {}]   ;;  %s1106_s3 = inlined_call_operand.vmem [shape: bf16[16,16], index: 3, kind: input, shape index: {}]   ;;  %s1107_s4 = inlined_call_operand.vmem [shape: f32[16,1], index: 4, kind: input, shape index: {}]   ;;  %s1108_s5 = inlined_call_operand.vmem [shape: f32[16,1], index: 5, kind: input, shape index: {}]   ;;  %s1109_s6 = inlined_call_operand.vmem [shape: f32[2,16,256], index: 6, kind: output, shape index: {}]  }
   0x1 LB: > { %s843_s22 = sadd.s32 4294967295, %s893_s21   ;;  %p847_p0 = scmp.ge.s32.totalorder %s893_s21, 1  ;;  %s893_s21 = sphi %s939_s21, %s16_s21  }
   0x2   : > { %p212_p1 = scmp.lt.s32.totalorder %s893_s21, 3 }
   0x4   : > { %p213_p2 = pnand %p847_p0, %p212_p1 }
   0x5   : > { %p242_p3 = scmp.lt.s32.totalorder (!%p213_p2), %s843_s22, 1  ;;  %v337_v0 = vlaneseq (!%p213_p2)  ;;  %v895_v1 = vmov (!%p213_p2), 0   ;;  %v952_v2 = vld [vmem:[%s1107_s4] sm:$0xff] (!%p213_p2)  ;;  %v961_v4 = vld [vmem:[%s1107_s4 + $0x8] sm:$0xff] (!%p213_p2)  ;;  %vm280_vm5 = vcmask (!%p213_p2), 130048   ;;  %s896_s9 = smov (!%p213_p2), 111  }
   0x6   : > { %216 = sbr.rel (%p213_p2) target bundleno = 849 (0x351), region = 44  ;;  %316 = vmatprep.mubr.bf16.mxu0 (!%p213_p2), %v895_v1  ;;  %880 = vset.pattern.permute.xlu0 (!%p213_p2), %v895_v1  ;;  %v882_v16 = vld [vmem:[%s1104_s1] sm:$0xff] (!%p213_p2)   ;;  %s897_s10 = smov (!%p213_p2), 113   ;;  %vm389_vm7 = vcmask (!%p213_p2), 908288   ;;  %vm484_vm8 = vcmask (!%p213_p2), 1039360   ;;  %vm453_vm10 = vcmask (!%p213_p2), 924672  }
   0x7   : > { %267 = vperm.xlu0 (!%p213_p2), %880, %v952_v2   ;;  %v338_v3 = vand.u32 (!%p213_p2), 127, %v337_v0  ;;  %881 = vset.pattern.permute.xlu1 (!%p213_p2), %v895_v1  ;;  %v378_v5 = vshrl.u32 (!%p213_p2), %v337_v0, 7  ;;  %s898_s11 = smov (!%p213_p2), 127   ;;  %s899_s12 = smov (!%p213_p2), 1  }
   0x8   : > { %s900_s13 = smov (!%p213_p2), 15   ;;  %s901_s14 = smov (!%p213_p2), 17  }
   0x9   : > { %v339_v6 = vadd.s32 (!%p213_p2), 128, %v338_v3  ;;  %v344_v7 = vand.u32 (!%p213_p2), 15, %v338_v3  ;;  %v379_v14 = vsub.s32 (!%p213_p2), 0, %v378_v5  ;;  %v383_v17 = vsub.s32 (!%p213_p2), 4, %v378_v5  ;;  %s902_s15 = smov (!%p213_p2), 16   ;;  %s903_s18 = smov (!%p213_p2), 112  }
   0xb   : > { %272 = vperm.xlu0 (!%p213_p2), %880, %v961_v4   ;;  %v351_v11 = vand.u32 (!%p213_p2), 15, %v339_v6  ;;  %vm364_vm0 = vcmp.ge.s32.totalorder (!%p213_p2), %v344_v7, 1  ;;  %vm366_vm1 = vcmp.le.s32.totalorder (!%p213_p2), %v344_v7, 14  ;;  %v885_v6 = vld [vmem:[%s1105_s2 + $0x4] ss:$8 sps:$4 sm:$0xff] (!%p213_p2)  }
   0xc   : > { %856 = vmatprep.mubr.msk.bf16.mxu1 (!%p213_p2), %vm280_vm5, %v885_v6 }
   0xd   : > { %s1111_s22 = smov (!%p242_p3, %s843_s22), 1  ;;  %vm365_vm2 = vcmp.ge.s32.totalorder %v351_v11, 1  ;;  %vm367_vm3 = vcmp.le.s32.totalorder %v351_v11, 14 }
   0xe   : > { %s861_s27 = sshll.u32 %s1111_s22, 5  ;;  %vm375_vm4 = vmpackc.low %vm365_vm2, %vm364_vm0  ;;  %vm470_vm2 = vcmask 121856  }
   0xf   : > { %s246_s30 = scalar_lea.vmem %s1103_s0, %s861_s27  ;;  %v376_v18 = vsel %vm375_vm4, 65537, %v895_v1  ;;  %vm439_vm6 = vmpackc.low %vm367_vm3, %vm366_vm1  ;;  %vm501_vm1 = vcmask 7168   ;;  %s251_s8 = scalar_lea.vmem %s1109_s6, %s861_s27 }
  0x10   : > { %v969_v8 = vld [vmem:[%s246_s30 + $0x8] sm:$0xff]  ;;  %v971_v9 = vld [vmem:[%s246_s30 + $0x18] sm:$0xff]  ;;  %v973_v10 = vld [vmem:[%s246_s30] sm:$0xff]  ;;  %v380_v19 = vrot.slane %v376_v18, %v379_v14  ;;  %v440_v20 = vsel %vm439_vm6, 65537, %v895_v1  ;;  %v384_v22 = vrot.slane %v376_v18, %v383_v17 }
  0x11   : > { %v260_v12 = vpack.c.bf16 %v971_v9, %v969_v8  ;;  %v978_v13 = vld [vmem:[%s246_s30 + $0x10] sm:$0xff]  ;;  %v444_v21 = vrot.slane %v440_v20, %v379_v14  ;;  %v448_v23 = vrot.slane %v440_v20, %v383_v17  ;;  %v713_v14 = vld [vmem:[%s1108_s5] sm:$0xff] }
  0x12   : > { %v259_v15 = vpack.c.bf16 %v978_v13, %v973_v10  ;;  %385 = vrot.lane.b32.xlu1 %v380_v19, %s896_s9 }
  0x13   : > { %284 = vmatprep.subr.bf16.mxu0 %v260_v12  ;;  %449 = vrot.lane.b32.xlu0 %v444_v21, %s897_s10 }
  0x14   : > { %285 = vmatpush1.bf16.msra.mxu0 %v259_v15  ;;  %v714_v15 = vld [vmem:[%s1108_s5 + $0x8] sm:$0xff] }
  0x16   : > { %387 = vrot.lane.b32.xlu1 %v384_v22, %s896_s9 }
  0x17   : > { %853 = vmatmul.mubr.msk.bf16.vlgmr.msra.gmra.mrb[0].mxu0 %vm280_vm5, %v882_v16  ;;  %480 = vrot.lane.b32.xlu0 %v380_v19, %s898_s11 }
  0x18   : > { %765 = vmatprep.mubr.bf16.mxu0 %v895_v1 }
  0x1a   : > { %451 = vrot.lane.b32.xlu1 %v448_v23, %s897_s10 }
  0x1b   : > { %515 = vrot.lane.b32.xlu0 %v444_v21, %s899_s12 }
  0x1e   : > { %482 = vrot.lane.b32.xlu1 %v384_v22, %s898_s11 }
  0x1f   : > { %544 = vrot.lane.b32.xlu0 %v380_v19, %s900_s13 }
  0x22   : > { %517 = vrot.lane.b32.xlu1 %v448_v23, %s899_s12 }
  0x23   : > { %592 = vrot.lane.b32.xlu0 %v444_v21, %s901_s14 }
  0x26   : > { %546 = vrot.lane.b32.xlu1 %v384_v22, %s900_s13 }
  0x27   : > { %400 = vrot.lane.b32.xlu0 %v895_v1, %s901_s14 }
  0x2a   : > { %594 = vrot.lane.b32.xlu1 %v448_v23, %s901_s14 }
  0x2b   : > { %464 = vrot.lane.b32.xlu0 %v895_v1, %s900_s13 }
  0x2e   : > { %419 = vrot.lane.b32.xlu1 %v895_v1, %s902_s15 }
  0x84   : > { %v386_v24 = vpop.permute.xlu1 %385 }
  0x86   : > { %v268_v25 = vpop.permute.xlu0 %267 }
  0x88   : > { %v388_v26 = vpop.permute.xlu1 %387 }
  0x89   : > { %v390_v38 = vsel %vm389_vm7, %v386_v24, %v388_v26  ;;  %vm393_vm11 = vcmp.ne.s16.totalorder %v388_v26, 0 }
  0x8a   : > { %v273_v27 = vpop.permute.xlu0 %272  ;;  %vm392_vm9 = vcmp.ne.s16.totalorder %v390_v38, 0 }
  0x8c   : > { %v452_v31 = vpop.permute.xlu1 %451 }
  0x8d   : > { %vm457_vm14 = vcmp.ne.s16.totalorder %v452_v31, 0 }
  0x8e   : > { %v450_v34 = vpop.permute.xlu0 %449 }
  0x8f   : > { %v454_v49 = vsel %vm453_vm10, %v450_v34, %v452_v31 }
  0x90   : > { %v483_v45 = vpop.permute.xlu1 %482  ;;  %vm456_vm13 = vcmp.ne.s16.totalorder %v454_v49, 0 }
  0x91   : > { %vm488_vm0 = vcmp.ne.s16.totalorder %v483_v45, 0 }
  0x92   : > { %v481_v46 = vpop.permute.xlu0 %480 }
  0x93   : > { %v485_v48 = vsel %vm484_vm8, %v481_v46, %v483_v45 }
  0x94   : > { %vm487_vm12 = vcmp.ne.s16.totalorder %v485_v48, 0  ;;  %v518_v56 = vpop.permute.xlu1 %517 }
  0x96   : > { %v516_v52 = vpop.permute.xlu0 %515 }
  0x97   : > { %vm520_vm15 = vcmp.ne.s16.totalorder %v516_v52, 0  ;;  %v519_v58 = vsel %vm501_vm1, %v516_v52, %v518_v56 }
  0x98   : > { %v547_v60 = vpop.permute.xlu1 %546  ;;  %vm521_vm4 = vcmp.ne.s16.totalorder %v519_v58, 0 }
  0x9a   : > { %v545_v59 = vpop.permute.xlu0 %544 }
  0x9b   : > { %vm549_vm3 = vcmp.ne.s16.totalorder %v545_v59, 0  ;;  %v548_v61 = vsel %vm470_vm2, %v545_v59, %v547_v60 }
  0x9c   : > { %vm550_vm6 = vcmp.ne.s16.totalorder %v548_v61, 0  ;;  %v595_v0 = vpop.permute.xlu1 %594 }
  0x9e   : > { %v593_v3 = vpop.permute.xlu0 %592 }
  0xa2   : > { %v401_v16 = vpop.permute.xlu0 %400 }
  0xa6   : > { %v465_v17 = vpop.permute.xlu0 %464 }
  0xea   : > { %v318_v28 = vpop.f32.mrb[0].mxu0 }
  0xeb   : > { %v319_v29 = vadd.f32 %v318_v28, %v268_v25  ;;  %v320_v30 = vpop.f32.mrb[1].mxu0 }
  0xec   : > { %v321_v32 = vadd.f32 %v320_v30, %v268_v25  ;;  %v322_v33 = vpop.f32.mrb[2].mxu0 }
  0xed   : > { %v323_v35 = vadd.f32 %v322_v33, %v273_v27  ;;  %v324_v36 = vpop.f32.mrb[3].mxu0  ;;  %v327_v39 = vmax.f32 %v319_v29, 0.0 }
  0xee   : > { %v325_v37 = vadd.f32 %v324_v36, %v273_v27  ;;  %v328_v41 = vmax.f32 %v321_v32, 0.0 }
  0xef   : > { %v329_v40 = vmax.f32 %v323_v35, 0.0 }
  0xf0   : > { %v330_v42 = vmax.f32 %v325_v37, 0.0 }
  0xf1   : > { %v1008_v43 = vpack.c.bf16 %v329_v40, %v327_v39 }
  0xf2   : > { %v1010_v44 = vpack.c.bf16 %v330_v42, %v328_v41 }
  0xf3   : > { %421 = vrot.lane.b32.xlu1 %v1008_v43, %s902_s15  ;;  %v395_v47 = vsel %vm392_vm9, %v1008_v43, 0  ;;  %v490_v51 = vsel %vm487_vm12, %v1008_v43, 0  ;;  %v459_v53 = vsel %vm456_vm13, %v1008_v43, 0  ;;  %v523_v55 = vsel %vm520_vm15, %v1008_v43, 0 }
  0xf4   : > { %402 = vrot.lane.b32.xlu0 %v395_v47, %s901_s14  ;;  %v396_v50 = vsel %vm393_vm11, %v1010_v44, 0  ;;  %v460_v54 = vsel %vm457_vm14, %v1010_v44, 0  ;;  %v491_v57 = vsel %vm488_vm0, %v1010_v44, 0  ;;  %v552_v62 = vsel %vm549_vm3, %v1008_v43, 0 }
  0xf5   : > { %v524_v63 = vsel %vm521_vm4, %v1010_v44, 0  ;;  %vm406_vm9 = vcmask 138240   ;;  %v553_v5 = vsel %vm550_vm6, %v1010_v44, 0  ;;  %vm597_vm12 = vcmp.ne.s16.totalorder %v593_v3, 0 }
  0xf6   : > { %v596_v7 = vsel %vm406_vm9, %v593_v3, %v595_v0  ;;  %v600_v12 = vsel %vm597_vm12, %v1008_v43, 0  ;;  %vm582_vm13 = vcmask 916480  }
  0xf7   : > { %404 = vrot.lane.b32.xlu1 %v396_v50, %s901_s14  ;;  %vm598_vm11 = vcmp.ne.s16.totalorder %v596_v7, 0 }
  0xf8   : > { %423 = vrot.lane.b32.xlu0 %v1010_v44, %s902_s15  ;;  %v601_v11 = vsel %vm598_vm11, %v1010_v44, 0 }
  0xfb   : > { %497 = vrot.lane.b32.xlu1 %v490_v51, %s899_s12 }
  0xfc   : > { %466 = vrot.lane.b32.xlu0 %v459_v53, %s900_s13  ;;  %v883_v53 = vld [vmem:[%s1105_s2] ss:$8 sps:$4 sm:$0xff]  }
  0xff   : > { %468 = vrot.lane.b32.xlu1 %v460_v54, %s900_s13 }
 0x100   : > { %529 = vrot.lane.b32.xlu0 %v523_v55, %s898_s11 }
 0x103   : > { %495 = vrot.lane.b32.xlu1 %v895_v1, %s899_s12 }
 0x104   : > { %499 = vrot.lane.b32.xlu0 %v491_v57, %s899_s12 }
 0x107   : > { %533 = vrot.lane.b32.xlu1 %v895_v1, %s898_s11 }
 0x108   : > { %562 = vrot.lane.b32.xlu0 %v895_v1, %s897_s10 }
 0x10b   : > { %558 = vrot.lane.b32.xlu1 %v552_v62, %s897_s10 }
 0x10c   : > { %531 = vrot.lane.b32.xlu0 %v524_v63, %s898_s11 }
 0x10f   : > { %560 = vrot.lane.b32.xlu1 %v553_v5, %s897_s10 }
 0x110   : > { %578 = vrot.lane.b32.xlu0 %v1010_v44, %s903_s18 }
 0x113   : > { %580 = vrot.lane.b32.xlu1 %v895_v1, %s903_s18 }
 0x114   : > { %576 = vrot.lane.b32.xlu0 %v1008_v43, %s903_s18 }
 0x117   : > { %608 = vrot.lane.b32.xlu1 %v601_v11, %s896_s9 }
 0x118   : > { %610 = vrot.lane.b32.xlu0 %v895_v1, %s896_s9  ;;  %v420_v1 = vpop.permute.xlu1 %419 }
 0x11b   : > { %606 = vrot.lane.b32.xlu1 %v600_v12, %s896_s9  ;;  %v886_v12 = vld [vmem:[%s1106_s3] sm:$0xff]  }
 0x11c   : > { %642 = vperm.xlu0 %880, %v952_v2  }
 0x11f   : > { %647 = vperm.xlu1 %881, %v961_v4  }
 0x120   : > { %717 = vperm.xlu0 %880, %v713_v14  }
 0x123   : > { %722 = vperm.xlu1 %881, %v714_v15  }
 0x165   : > { %v422_v18 = vpop.permute.xlu1 %421 }
 0x166   : > { %v403_v19 = vpop.permute.xlu0 %402  ;;  %v426_v25 = vsel %vm280_vm5, %v420_v1, %v422_v18 }
 0x167   : > { %v407_v22 = vsel %vm406_vm9, %v401_v16, %v403_v19 }
 0x169   : > { %v405_v20 = vpop.permute.xlu1 %404 }
 0x16a   : > { %v424_v21 = vpop.permute.xlu0 %423  ;;  %v408_v2 = vsel %vm406_vm9, %v403_v19, %v405_v20 }
 0x16b   : > { %662 = vmatprep.subr.bf16.mxu1 %v408_v2  ;;  %v427_v4 = vsel %vm280_vm5, %v422_v18, %v424_v21 }
 0x16c   : > { %663 = vmatpush1.bf16.msra.mxu1 %v407_v22 }
 0x16d   : > { %v498_v23 = vpop.permute.xlu1 %497  ;;  %664 = vmatprep.subr.bf16.mxu1 %v427_v4 }
 0x16e   : > { %v467_v24 = vpop.permute.xlu0 %466 }
 0x16f   : > { %v471_v29 = vsel %vm470_vm2, %v465_v17, %v467_v24 }
 0x170   : > { %665 = vmatpush1.bf16.msra.mxu1 %v426_v25 }
 0x171   : > { %v469_v26 = vpop.permute.xlu1 %468 }
 0x172   : > { %v530_v27 = vpop.permute.xlu0 %529  ;;  %v472_v28 = vsel %vm470_vm2, %v467_v24, %v469_v26 }
 0x173   : > { %666 = vmatprep.subr.bf16.mxu1 %v472_v28 }
 0x174   : > { %667 = vmatpush1.bf16.msra.mxu1 %v471_v29 }
 0x175   : > { %v496_v30 = vpop.permute.xlu1 %495 }
 0x176   : > { %v500_v31 = vpop.permute.xlu0 %499  ;;  %v502_v33 = vsel %vm501_vm1, %v496_v30, %v498_v23 }
 0x177   : > { %v503_v32 = vsel %vm501_vm1, %v498_v23, %v500_v31 }
 0x178   : > { %668 = vmatprep.subr.bf16.mxu1 %v503_v32 }
 0x179   : > { %v534_v34 = vpop.permute.xlu1 %533  ;;  %669 = vmatpush1.bf16.msra.mxu1 %v502_v33 }
 0x17a   : > { %670 = vmatprep.subr.bf16.mxu1 %v1010_v44  ;;  %v563_v35 = vpop.permute.xlu0 %562 }
 0x17d   : > { %v559_v36 = vpop.permute.xlu1 %558  ;;  %671 = vmatpush1.bf16.msra.mxu1 %v1008_v43 }
 0x17e   : > { %v532_v37 = vpop.permute.xlu0 %531 }
 0x17f   : > { %v536_v38 = vsel %vm484_vm8, %v532_v37, %v534_v34  ;;  %v535_v39 = vsel %vm484_vm8, %v530_v27, %v532_v37 }
 0x180   : > { %672 = vmatprep.subr.bf16.mxu1 %v536_v38 }
 0x181   : > { %v561_v40 = vpop.permute.xlu1 %560  ;;  %673 = vmatpush1.bf16.msra.mxu1 %v535_v39 }
 0x182   : > { %v579_v41 = vpop.permute.xlu0 %578  ;;  %v565_v42 = vsel %vm453_vm10, %v561_v40, %v563_v35  ;;  %v564_v45 = vsel %vm453_vm10, %v559_v36, %v561_v40 }
 0x183   : > { %674 = vmatprep.subr.bf16.mxu1 %v565_v42 }
 0x185   : > { %v581_v44 = vpop.permute.xlu1 %580  ;;  %675 = vmatpush1.bf16.msra.mxu1 %v564_v45 }
 0x186   : > { %v577_v46 = vpop.permute.xlu0 %576  ;;  %v584_v47 = vsel %vm582_vm13, %v579_v41, %v581_v44 }
 0x187   : > { %676 = vmatprep.subr.bf16.mxu1 %v584_v47  ;;  %v583_v43 = vsel %vm582_vm13, %v577_v46, %v579_v41 }
 0x189   : > { %v609_v48 = vpop.permute.xlu1 %608  ;;  %677 = vmatpush1.bf16.msra.mxu1 %v583_v43 }
 0x18a   : > { %v611_v49 = vpop.permute.xlu0 %610 }
 0x18b   : > { %v613_v50 = vsel %vm389_vm7, %v609_v48, %v611_v49 }
 0x18c   : > { %678 = vmatprep.subr.bf16.mxu1 %v613_v50 }
 0x18d   : > { %v607_v51 = vpop.permute.xlu1 %606 }
 0x18e   : > { %v612_v52 = vsel %vm389_vm7, %v607_v51, %v609_v48 }
 0x18f   : > { %679 = vmatpush1.bf16.msra.mxu1 %v612_v52 }
 0x192   : > { %695 = vmatmul.mubr.bf16.vlgmr.msra.gmra.mrb[0].mxu1 %v883_v53 }
 0x19b   : > { %v643_v54 = vpop.permute.xlu0 %642 }
 0x19e   : > { %v648_v58 = vpop.permute.xlu1 %647 }
 0x19f   : > { %v718_v14 = vpop.permute.xlu0 %717 }
 0x1a2   : > { %v723_v17 = vpop.permute.xlu1 %722 }
 0x265   : > { %v696_v55 = vpop.f32.mrb[0].mxu1 }
 0x266   : > { %v697_v56 = vadd.f32 %v696_v55, %v643_v54  ;;  %v698_v57 = vpop.f32.mrb[1].mxu1 }
 0x267   : > { %v699_v59 = vadd.f32 %v698_v57, %v643_v54  ;;  %v700_v60 = vpop.f32.mrb[2].mxu1 }
 0x268   : > { %v701_v61 = vadd.f32 %v700_v60, %v648_v58  ;;  %v702_v62 = vpop.f32.mrb[3].mxu1  ;;  %v705_v0 = vmax.f32 %v697_v56, 0.0 }
 0x269   : > { %v703_v63 = vadd.f32 %v702_v62, %v648_v58  ;;  %v706_v5 = vmax.f32 %v699_v59, 0.0 }
 0x26a   : > { %v707_v3 = vmax.f32 %v701_v61, 0.0 }
 0x26b   : > { %v708_v6 = vmax.f32 %v703_v63, 0.0 }
 0x26c   : > { %v711_v7 = vpack.c.bf16 %v707_v3, %v705_v0 }
 0x26d   : > { %v712_v11 = vpack.c.bf16 %v708_v6, %v706_v5 }
 0x26f   : > { %733 = vmatprep.subr.bf16.mxu0 %v712_v11 }
 0x270   : > { %734 = vmatpush1.bf16.msra.mxu0 %v711_v7 }
 0x273   : > { %858 = vmatmul.mubr.msk.bf16.vlgmr.msra.gmra.mrb[4].mxu0 %vm280_vm5, %v886_v12 }
 0x346   : > { %v767_v15 = vpop.f32.mrb[4].mxu0 }
 0x347   : > { %v768_v16 = vadd.f32 %v767_v15, %v718_v14  ;;  %v769_v1 = vpop.f32.mrb[5].mxu0 }
 0x348   : > { %v770_v18 = vadd.f32 %v769_v1, %v718_v14  ;;  %v771_v19 = vpop.f32.mrb[6].mxu0 }
 0x349   : > { %v776_v20 = vadd.f32 %v768_v16, %v973_v10  ;;  %v772_v21 = vadd.f32 %v771_v19, %v723_v17  ;;  %v773_v2 = vpop.f32.mrb[7].mxu0 }
 0x34a   : > { %v777_v22 = vadd.f32 %v770_v18, %v969_v8  ;;  %v774_v4 = vadd.f32 %v773_v2, %v723_v17 }
 0x34b   : > { %v780_v23 = vmax.f32 %v776_v20, 0.0  ;;  %v778_v24 = vadd.f32 %v772_v21, %v978_v13 }
 0x34c   : > { %v781_v25 = vmax.f32 %v777_v22, 0.0  ;;  %v779_v26 = vadd.f32 %v774_v4, %v971_v9 }
 0x34d   : > { %784 = vst [vmem:[%s251_s8] sm:$0xff] %v780_v23  ;;  %v782_v27 = vmax.f32 %v778_v24, 0.0 }
 0x34e   : > { %785 = vst [vmem:[%s251_s8 + $0x8] sm:$0xff] %v781_v25  ;;  %v783_v10 = vmax.f32 %v779_v26, 0.0 }
 0x34f   : > { %786 = vst [vmem:[%s251_s8 + $0x10] sm:$0xff] %v782_v27 }
 0x350   : > { %787 = vst [vmem:[%s251_s8 + $0x18] sm:$0xff] %v783_v10 }
 0x351 PF: > { %s16_s21 = sadd.s32 1, %s893_s21  }
 0x352   : > { %p13_p4 = scmp.ge.s32.totalorder %s16_s21, 4  }
 0x354   :  { %15 = sbr.rel (!%p13_p4) target bundleno = 1 (0x1), region = 74 }

</bundles_post_ra>
